<compile_context>
chip_gen: v5e
topology: v5e:2x2
jax: 0.10.0
libtpu: 0.0.40
codegen_flags: <defaults>
</compile_context>

<pallas_src>
import jax
import jax.numpy as jnp
from jax.experimental import pallas as pl
from jax.experimental.pallas import tpu as pltpu

LANE = 128  # TPU lane width; all last dims are padded to a multiple of this.


def _round_up(n, m):
    return ((n + m - 1) // m) * m


def dqn_kernel(x_ref,
               w1_ref, b1_ref,
               w2_ref, b2_ref,
               w22_ref, b22_ref,
               w222_ref, b222_ref,
               w3_ref, b3_ref,
               out_ref):
    """One batch tile of the DQN forward: 4x (Linear + ReLU) + final Linear.

    Activations/weights are bf16 into the MXU; accumulate / bias-add / ReLU
    in f32 (keeps v5e's f32-only VPU happy), cast back to bf16 between layers.
    """

    def linear_relu(h_bf16, w_ref, b_ref):
        z = jnp.dot(h_bf16, w_ref[...], preferred_element_type=jnp.float32)
        z = z + b_ref[...]                       # f32 bias, broadcasts over rows
        return jnp.maximum(z, 0.0).astype(jnp.bfloat16)

    h = x_ref[...]                               # bf16, already lane-padded
    h = linear_relu(h, w1_ref, b1_ref)
    h = linear_relu(h, w2_ref, b2_ref)
    h = linear_relu(h, w22_ref, b22_ref)
    h = linear_relu(h, w222_ref, b222_ref)

    # final layer: no activation
    out = jnp.dot(h, w3_ref[...], preferred_element_type=jnp.float32) + b3_ref[...]
    out_ref[...] = out.astype(out_ref.dtype)


def dqn_forward(x, params, n_actions, *, tm=128):
    """x: [B, n_observations] f32.  params: lane-padded dict from
    init_dqn_params (bf16 weights [in_pad, out_pad], f32 biases [1, out_pad]).
    Returns [B, n_actions] f32."""
    B, n_obs = x.shape
    d_in = params["w1"].shape[0]
    d_h = params["w1"].shape[1]
    d_out = params["w3"].shape[1]

    # Pad batch up to a multiple of the batch tile and features to d_in,
    # then cast once to bf16 for the MXU.
    b_pad = _round_up(max(B, 1), tm)
    x_pad = jnp.zeros((b_pad, d_in), jnp.float32).at[:B, :n_obs].set(x)
    x_bf16 = x_pad.astype(jnp.bfloat16)

    operands = (
        x_bf16,
        params["w1"], params["b1"],
        params["w2"], params["b2"],
        params["w22"], params["b22"],
        params["w222"], params["b222"],
        params["w3"], params["b3"],
    )

    batch_map = lambda i: (i, 0)   # x / out: tile over batch
    const_map = lambda i: (0, 0)   # weights / biases: resident, one DMA total

    in_specs = [
        pl.BlockSpec((tm, d_in), batch_map),
        pl.BlockSpec((d_in, d_h), const_map), pl.BlockSpec((1, d_h), const_map),
        pl.BlockSpec((d_h, d_h), const_map), pl.BlockSpec((1, d_h), const_map),
        pl.BlockSpec((d_h, d_h), const_map), pl.BlockSpec((1, d_h), const_map),
        pl.BlockSpec((d_h, d_h), const_map), pl.BlockSpec((1, d_h), const_map),
        pl.BlockSpec((d_h, d_out), const_map), pl.BlockSpec((1, d_out), const_map),
    ]
    out_specs = pl.BlockSpec((tm, d_out), batch_map)

    flops = 2 * b_pad * (d_in * d_h + 3 * d_h * d_h + d_h * d_out)
    bytes_accessed = (
        x_bf16.size * 2
        + sum(params[k].size * params[k].dtype.itemsize for k in params)
        + b_pad * d_out * 4
    )

    out_pad = pl.pallas_call(
        dqn_kernel,
        out_shape=jax.ShapeDtypeStruct((b_pad, d_out), jnp.float32),
        grid=(b_pad // tm,),
        in_specs=in_specs,
        out_specs=out_specs,
        compiler_params=pltpu.CompilerParams(
            dimension_semantics=("parallel",)),
        cost_estimate=pl.CostEstimate(
            flops=flops, transcendentals=0, bytes_accessed=bytes_accessed),
    )(*operands)

    return out_pad[:B, :n_actions]


def init_dqn_params(key, n_observations, n_actions, hidden_dim):
    """Deterministic init mimicking nn.Linear default (uniform +-1/sqrt(fan_in)).

    Weights are stored transposed ([in, out]), lane-padded to multiples of 128
    with zeros, and cast to bf16.  Biases are f32, shape [1, out_pad], padded
    columns zero (so padded lanes stay exactly 0 through the ReLU chain)."""
    d_in = _round_up(n_observations, LANE)
    d_h = _round_up(hidden_dim, LANE)
    d_out = _round_up(n_actions, LANE)

    dims = [
        ("w1", "b1", n_observations, hidden_dim, d_in, d_h),
        ("w2", "b2", hidden_dim, hidden_dim, d_h, d_h),
        ("w22", "b22", hidden_dim, hidden_dim, d_h, d_h),
        ("w222", "b222", hidden_dim, hidden_dim, d_h, d_h),
        ("w3", "b3", hidden_dim, n_actions, d_h, d_out),
    ]
    params = {}
    for wname, bname, fan_in, fan_out, in_pad, out_pad in dims:
        key, kw, kb = jax.random.split(key, 3)
        bound = 1.0 / (fan_in ** 0.5)
        w = jax.random.uniform(kw, (fan_in, fan_out), jnp.float32,
                               minval=-bound, maxval=bound)
        b = jax.random.uniform(kb, (1, fan_out), jnp.float32,
                               minval=-bound, maxval=bound)
        w_pad = jnp.zeros((in_pad, out_pad), jnp.float32).at[:fan_in, :fan_out].set(w)
        b_pad = jnp.zeros((1, out_pad), jnp.float32).at[:, :fan_out].set(b)
        params[wname] = w_pad.astype(jnp.bfloat16)
        params[bname] = b_pad
    return params


def dqn_reference(x, params, n_actions):
    """Pure-JAX reference replicating the kernel's bf16-weight / f32-accumulate
    numerics (bf16 upcasts are exact)."""
    f32 = lambda a: a.astype(jnp.float32)
    d_in = params["w1"].shape[0]
    B, n_obs = x.shape
    x_pad = jnp.zeros((B, d_in), jnp.float32).at[:, :n_obs].set(x)
    h = f32(x_pad.astype(jnp.bfloat16))
    for wn, bn in (("w1", "b1"), ("w2", "b2"), ("w22", "b22"), ("w222", "b222")):
        z = h @ f32(params[wn]) + params[bn]
        h = f32(jnp.maximum(z, 0.0).astype(jnp.bfloat16))
    out = h @ f32(params["w3"]) + params["b3"]
    return out[:, :n_actions]


if __name__ == "__main__":
    n_observations = 8
    n_actions = 4
    hidden_dim = 32
    batch = 8

    key = jax.random.PRNGKey(0)
    key, kx = jax.random.split(key)
    x = jax.random.normal(kx, (batch, n_observations), jnp.float32)

    params = init_dqn_params(key, n_observations, n_actions, hidden_dim)

    out = dqn_forward(x, params, n_actions)
    out = jax.block_until_ready(out)

    ref = dqn_reference(x, params, n_actions)
    assert out.shape == (batch, n_actions)
    assert jnp.allclose(out, ref, atol=2e-3, rtol=2e-3), "mismatch vs reference"

    print("KERNEL_OK")
</pallas_src>

<mosaic_0001>
module attributes {stable_mosaic.version = 11 : i64} {
  func.func @dqn_kernel(%arg0: i32, %arg1: memref<128x128xbf16, #tpu.memory_space<vmem>>, %arg2: memref<128x128xbf16, #tpu.memory_space<vmem>>, %arg3: memref<1x128xf32, #tpu.memory_space<vmem>>, %arg4: memref<128x128xbf16, #tpu.memory_space<vmem>>, %arg5: memref<1x128xf32, #tpu.memory_space<vmem>>, %arg6: memref<128x128xbf16, #tpu.memory_space<vmem>>, %arg7: memref<1x128xf32, #tpu.memory_space<vmem>>, %arg8: memref<128x128xbf16, #tpu.memory_space<vmem>>, %arg9: memref<1x128xf32, #tpu.memory_space<vmem>>, %arg10: memref<128x128xbf16, #tpu.memory_space<vmem>>, %arg11: memref<1x128xf32, #tpu.memory_space<vmem>>, %arg12: memref<128x128xf32, #tpu.memory_space<vmem>>) attributes {dimension_semantics = [#tpu.dimension_semantics<parallel>], iteration_bounds = array<i64: 1>, scalar_prefetch = 0 : i64, scratch_operands = 0 : i64, tpu.core_type = #tpu.core_type<tc>, window_params = [{transform_indices = @transform_0, window_bounds = array<i64: 128, 128>}, {pipeline_mode = #tpu.pipeline_mode<synchronous>, transform_indices = @transform_1, window_bounds = array<i64: 128, 128>}, {pipeline_mode = #tpu.pipeline_mode<synchronous>, transform_indices = @transform_2, window_bounds = array<i64: 1, 128>}, {pipeline_mode = #tpu.pipeline_mode<synchronous>, transform_indices = @transform_3, window_bounds = array<i64: 128, 128>}, {pipeline_mode = #tpu.pipeline_mode<synchronous>, transform_indices = @transform_4, window_bounds = array<i64: 1, 128>}, {pipeline_mode = #tpu.pipeline_mode<synchronous>, transform_indices = @transform_5, window_bounds = array<i64: 128, 128>}, {pipeline_mode = #tpu.pipeline_mode<synchronous>, transform_indices = @transform_6, window_bounds = array<i64: 1, 128>}, {pipeline_mode = #tpu.pipeline_mode<synchronous>, transform_indices = @transform_7, window_bounds = array<i64: 128, 128>}, {pipeline_mode = #tpu.pipeline_mode<synchronous>, transform_indices = @transform_8, window_bounds = array<i64: 1, 128>}, {pipeline_mode = #tpu.pipeline_mode<synchronous>, transform_indices = @transform_9, window_bounds = array<i64: 128, 128>}, {pipeline_mode = #tpu.pipeline_mode<synchronous>, transform_indices = @transform_10, window_bounds = array<i64: 1, 128>}, {transform_indices = @transform_11, window_bounds = array<i64: 128, 128>}]} {
    %c0 = arith.constant 0 : index
    %c0_0 = arith.constant 0 : index
    %0 = vector.load %arg1[%c0, %c0_0] : memref<128x128xbf16, #tpu.memory_space<vmem>>, vector<128x128xbf16>
    %c0_1 = arith.constant 0 : index
    %c0_2 = arith.constant 0 : index
    %1 = vector.load %arg2[%c0_1, %c0_2] : memref<128x128xbf16, #tpu.memory_space<vmem>>, vector<128x128xbf16>
    %cst = arith.constant dense<0.000000e+00> : vector<128x128xf32>
    %2 = tpu.matmul %0, %1, %cst {dimension_numbers = #tpu.dot_dimension_numbers<[1], [0], [0], [1], [0, 0, 1, 1], [], []>} : vector<128x128xbf16>, vector<128x128xbf16>, vector<128x128xf32> -> vector<128x128xf32>
    %c0_3 = arith.constant 0 : index
    %c0_4 = arith.constant 0 : index
    %3 = vector.load %arg3[%c0_3, %c0_4] : memref<1x128xf32, #tpu.memory_space<vmem>>, vector<1x128xf32>
    %4 = vector.broadcast %3 : vector<1x128xf32> to vector<128x128xf32>
    %5 = arith.addf %2, %4 : vector<128x128xf32>
    %cst_5 = arith.constant 0.000000e+00 : f32
    %6 = vector.broadcast %cst_5 : f32 to vector<128x128xf32>
    %7 = arith.maximumf %5, %6 : vector<128x128xf32>
    %8 = arith.truncf %7 : vector<128x128xf32> to vector<128x128xbf16>
    %c0_6 = arith.constant 0 : index
    %c0_7 = arith.constant 0 : index
    %9 = vector.load %arg4[%c0_6, %c0_7] : memref<128x128xbf16, #tpu.memory_space<vmem>>, vector<128x128xbf16>
    %cst_8 = arith.constant dense<0.000000e+00> : vector<128x128xf32>
    %10 = tpu.matmul %8, %9, %cst_8 {dimension_numbers = #tpu.dot_dimension_numbers<[1], [0], [0], [1], [0, 0, 1, 1], [], []>} : vector<128x128xbf16>, vector<128x128xbf16>, vector<128x128xf32> -> vector<128x128xf32>
    %c0_9 = arith.constant 0 : index
    %c0_10 = arith.constant 0 : index
    %11 = vector.load %arg5[%c0_9, %c0_10] : memref<1x128xf32, #tpu.memory_space<vmem>>, vector<1x128xf32>
    %12 = vector.broadcast %11 : vector<1x128xf32> to vector<128x128xf32>
    %13 = arith.addf %10, %12 : vector<128x128xf32>
    %cst_11 = arith.constant 0.000000e+00 : f32
    %14 = vector.broadcast %cst_11 : f32 to vector<128x128xf32>
    %15 = arith.maximumf %13, %14 : vector<128x128xf32>
    %16 = arith.truncf %15 : vector<128x128xf32> to vector<128x128xbf16>
    %c0_12 = arith.constant 0 : index
    %c0_13 = arith.constant 0 : index
    %17 = vector.load %arg6[%c0_12, %c0_13] : memref<128x128xbf16, #tpu.memory_space<vmem>>, vector<128x128xbf16>
    %cst_14 = arith.constant dense<0.000000e+00> : vector<128x128xf32>
    %18 = tpu.matmul %16, %17, %cst_14 {dimension_numbers = #tpu.dot_dimension_numbers<[1], [0], [0], [1], [0, 0, 1, 1], [], []>} : vector<128x128xbf16>, vector<128x128xbf16>, vector<128x128xf32> -> vector<128x128xf32>
    %c0_15 = arith.constant 0 : index
    %c0_16 = arith.constant 0 : index
    %19 = vector.load %arg7[%c0_15, %c0_16] : memref<1x128xf32, #tpu.memory_space<vmem>>, vector<1x128xf32>
    %20 = vector.broadcast %19 : vector<1x128xf32> to vector<128x128xf32>
    %21 = arith.addf %18, %20 : vector<128x128xf32>
    %cst_17 = arith.constant 0.000000e+00 : f32
    %22 = vector.broadcast %cst_17 : f32 to vector<128x128xf32>
    %23 = arith.maximumf %21, %22 : vector<128x128xf32>
    %24 = arith.truncf %23 : vector<128x128xf32> to vector<128x128xbf16>
    %c0_18 = arith.constant 0 : index
    %c0_19 = arith.constant 0 : index
    %25 = vector.load %arg8[%c0_18, %c0_19] : memref<128x128xbf16, #tpu.memory_space<vmem>>, vector<128x128xbf16>
    %cst_20 = arith.constant dense<0.000000e+00> : vector<128x128xf32>
    %26 = tpu.matmul %24, %25, %cst_20 {dimension_numbers = #tpu.dot_dimension_numbers<[1], [0], [0], [1], [0, 0, 1, 1], [], []>} : vector<128x128xbf16>, vector<128x128xbf16>, vector<128x128xf32> -> vector<128x128xf32>
    %c0_21 = arith.constant 0 : index
    %c0_22 = arith.constant 0 : index
    %27 = vector.load %arg9[%c0_21, %c0_22] : memref<1x128xf32, #tpu.memory_space<vmem>>, vector<1x128xf32>
    %28 = vector.broadcast %27 : vector<1x128xf32> to vector<128x128xf32>
    %29 = arith.addf %26, %28 : vector<128x128xf32>
    %cst_23 = arith.constant 0.000000e+00 : f32
    %30 = vector.broadcast %cst_23 : f32 to vector<128x128xf32>
    %31 = arith.maximumf %29, %30 : vector<128x128xf32>
    %32 = arith.truncf %31 : vector<128x128xf32> to vector<128x128xbf16>
    %c0_24 = arith.constant 0 : index
    %c0_25 = arith.constant 0 : index
    %33 = vector.load %arg10[%c0_24, %c0_25] : memref<128x128xbf16, #tpu.memory_space<vmem>>, vector<128x128xbf16>
    %cst_26 = arith.constant dense<0.000000e+00> : vector<128x128xf32>
    %34 = tpu.matmul %32, %33, %cst_26 {dimension_numbers = #tpu.dot_dimension_numbers<[1], [0], [0], [1], [0, 0, 1, 1], [], []>} : vector<128x128xbf16>, vector<128x128xbf16>, vector<128x128xf32> -> vector<128x128xf32>
    %c0_27 = arith.constant 0 : index
    %c0_28 = arith.constant 0 : index
    %35 = vector.load %arg11[%c0_27, %c0_28] : memref<1x128xf32, #tpu.memory_space<vmem>>, vector<1x128xf32>
    %36 = vector.broadcast %35 : vector<1x128xf32> to vector<128x128xf32>
    %37 = arith.addf %34, %36 : vector<128x128xf32>
    %c0_29 = arith.constant 0 : index
    %c0_30 = arith.constant 0 : index
    %38 = vector.load %arg12[%c0_29, %c0_30] : memref<128x128xf32, #tpu.memory_space<vmem>>, vector<128x128xf32>
    tpu.vector_store %arg12[%c0_29, %c0_30], %37 {strides = array<i32>} : memref<128x128xf32, #tpu.memory_space<vmem>>, vector<128x128xf32>,
    return
  }
  func.func @transform_0(%arg0: i32) -> (i32, i32) {
    %c0_i32 = arith.constant 0 : i32
    %c0_i32_0 = arith.constant 0 : i32
    return %arg0, %c0_i32 : i32, i32
  }
  func.func @transform_1(%arg0: i32) -> (i32, i32) {
    %c0_i32 = arith.constant 0 : i32
    %c0_i32_0 = arith.constant 0 : i32
    %c0_i32_1 = arith.constant 0 : i32
    return %c0_i32, %c0_i32_0 : i32, i32
  }
  func.func @transform_2(%arg0: i32) -> (i32, i32) {
    %c0_i32 = arith.constant 0 : i32
    %c0_i32_0 = arith.constant 0 : i32
    %c0_i32_1 = arith.constant 0 : i32
    return %c0_i32, %c0_i32_0 : i32, i32
  }
  func.func @transform_3(%arg0: i32) -> (i32, i32) {
    %c0_i32 = arith.constant 0 : i32
    %c0_i32_0 = arith.constant 0 : i32
    %c0_i32_1 = arith.constant 0 : i32
    return %c0_i32, %c0_i32_0 : i32, i32
  }
  func.func @transform_4(%arg0: i32) -> (i32, i32) {
    %c0_i32 = arith.constant 0 : i32
    %c0_i32_0 = arith.constant 0 : i32
    %c0_i32_1 = arith.constant 0 : i32
    return %c0_i32, %c0_i32_0 : i32, i32
  }
  func.func @transform_5(%arg0: i32) -> (i32, i32) {
    %c0_i32 = arith.constant 0 : i32
    %c0_i32_0 = arith.constant 0 : i32
    %c0_i32_1 = arith.constant 0 : i32
    return %c0_i32, %c0_i32_0 : i32, i32
  }
  func.func @transform_6(%arg0: i32) -> (i32, i32) {
    %c0_i32 = arith.constant 0 : i32
    %c0_i32_0 = arith.constant 0 : i32
    %c0_i32_1 = arith.constant 0 : i32
    return %c0_i32, %c0_i32_0 : i32, i32
  }
  func.func @transform_7(%arg0: i32) -> (i32, i32) {
    %c0_i32 = arith.constant 0 : i32
    %c0_i32_0 = arith.constant 0 : i32
    %c0_i32_1 = arith.constant 0 : i32
    return %c0_i32, %c0_i32_0 : i32, i32
  }
  func.func @transform_8(%arg0: i32) -> (i32, i32) {
    %c0_i32 = arith.constant 0 : i32
    %c0_i32_0 = arith.constant 0 : i32
    %c0_i32_1 = arith.constant 0 : i32
    return %c0_i32, %c0_i32_0 : i32, i32
  }
  func.func @transform_9(%arg0: i32) -> (i32, i32) {
    %c0_i32 = arith.constant 0 : i32
    %c0_i32_0 = arith.constant 0 : i32
    %c0_i32_1 = arith.constant 0 : i32
    return %c0_i32, %c0_i32_0 : i32, i32
  }
  func.func @transform_10(%arg0: i32) -> (i32, i32) {
    %c0_i32 = arith.constant 0 : i32
    %c0_i32_0 = arith.constant 0 : i32
    %c0_i32_1 = arith.constant 0 : i32
    return %c0_i32, %c0_i32_0 : i32, i32
  }
  func.func @transform_11(%arg0: i32) -> (i32, i32) {
    %c0_i32 = arith.constant 0 : i32
    %c0_i32_0 = arith.constant 0 : i32
    return %arg0, %c0_i32 : i32, i32
  }
}

</mosaic_0001>

<bundles_post_ra>
// kernel: tpu_custom_call.1
= control target key start
LH: loop header
LB: loop body
LE: loop exit
PB: predicated region body
PF: predicated region fallthrough
CT: control target
= control target key end

     0   :  { %16 = vsyncpa [#allocation3], 0  ;;  %s1553_s0 = inlined_call_operand.hbm [shape: bf16[128,128], index: 0, kind: input, shape index: {}]   ;;  %s1554_s1 = inlined_call_operand.hbm [shape: bf16[128,128], index: 1, kind: input, shape index: {}]   ;;  %s1555_s2 = inlined_call_operand.vmem [shape: f32[1,128], index: 2, kind: input, shape index: {}]   ;;  %s1556_s3 = inlined_call_operand.hbm [shape: bf16[128,128], index: 3, kind: input, shape index: {}]   ;;  %s1557_s4 = inlined_call_operand.vmem [shape: f32[1,128], index: 4, kind: input, shape index: {}]   ;;  %s1558_s5 = inlined_call_operand.hbm [shape: bf16[128,128], index: 5, kind: input, shape index: {}]   ;;  %s1559_s6 = inlined_call_operand.vmem [shape: f32[1,128], index: 6, kind: input, shape index: {}]   ;;  %s1560_s7 = inlined_call_operand.hbm [shape: bf16[128,128], index: 7, kind: input, shape index: {}]   ;;  %s1561_s8 = inlined_call_operand.vmem [shape: f32[1,128], index: 8, kind: input, shape index: {}]   ;;  %s1562_s9 = inlined_call_operand.hbm [shape: bf16[128,128], index: 9, kind: input, shape index: {}]   ;;  %s1563_s10 = inlined_call_operand.vmem [shape: f32[1,128], index: 10, kind: input, shape index: {}]   ;;  %s1564_s11 = inlined_call_operand.hbm [shape: f32[128,128], index: 11, kind: output, shape index: {}]  }
   0x1   :  { %17 = vsyncpa [#allocation6], 0 }
   0x2   :  { %18 = vsyncpa [#allocation9], 0 }
   0x3   :  { %19 = vsyncpa [#allocation12], 0 }
   0x4   :  { %20 = vsyncpa [#allocation4], 0  ;;  %s38_s19 = sshll.u32 %s1554_s1, 4  ;;  %s1374_s20 = smov [#allocation5]   ;;  %s39_s19 = int_to_ptr.hbm [resolvable:$true] %s38_s19 }
   0x5   :  { %s40_s21 = sshll.u32 %s1374_s20, 4  ;;  %s68_s24 = sshll.u32 %s1558_s5, 4  ;;  %s41_s21 = int_to_ptr.vmem [resolvable:$true] %s40_s21  ;;  %s69_s24 = int_to_ptr.hbm [resolvable:$true] %s68_s24 }
   0x6   :  { %s1375_s25 = smov 64   ;;  %s1376_s26 = smov 4  }
   0x7   :  { %46 = dma.hbm_to_vmem [thread:$0]  %s39_s19, 1024, %s41_s21, [#allocation6], %s1375_s25, %s1375_s25, %s1376_s26  }
   0x8   :  { %s1377_s27 = smov [#allocation8]   ;;  %s25_s1 = sshll.u32 %s1553_s0, 4  ;;  %s26_s1 = int_to_ptr.hbm [resolvable:$true] %s25_s1 }
   0x9   :  { %s70_s28 = sshll.u32 %s1377_s27, 4  ;;  %s53_s13 = sshll.u32 %s1556_s3, 4  ;;  %s71_s28 = int_to_ptr.vmem [resolvable:$true] %s70_s28  ;;  %s54_s13 = int_to_ptr.hbm [resolvable:$true] %s53_s13 }
   0xa   :  { %76 = dma.hbm_to_vmem [thread:$0]  %s69_s24, 1024, %s71_s28, [#allocation9], %s1375_s25, %s1375_s25, %s1376_s26  }
   0xb   :  { %s1378_s14 = smov [#allocation2]   ;;  %s1379_s16 = smov [#allocation7]  }
   0xc   :  { %s27_s15 = sshll.u32 %s1378_s14, 4  ;;  %s55_s0 = sshll.u32 %s1379_s16, 4  ;;  %s28_s15 = int_to_ptr.vmem [resolvable:$true] %s27_s15  ;;  %s56_s0 = int_to_ptr.vmem [resolvable:$true] %s55_s0 }
   0xd   :  { %33 = dma.hbm_to_vmem [thread:$0]  %s26_s1, 1024, %s28_s15, [#allocation3], %s1375_s25, %s1375_s25, %s1376_s26  }
   0xe   :  { %s83_s19 = sshll.u32 %s1560_s7, 4  ;;  %s98_s21 = sshll.u32 %s1562_s9, 4  ;;  %s84_s19 = int_to_ptr.hbm [resolvable:$true] %s83_s19  ;;  %s99_s21 = int_to_ptr.hbm [resolvable:$true] %s98_s21 }
   0xf   :  { %61 = dma.hbm_to_vmem [thread:$0]  %s54_s13, 1024, %s56_s0, [#allocation6], %s1375_s25, %s1375_s25, %s1376_s26  }
  0x10   :  { %s1380_s22 = smov [#allocation10]   ;;  %s1381_s24 = smov [#allocation11]  }
  0x11   :  { %s85_s23 = sshll.u32 %s1380_s22, 4  ;;  %s100_s7 = sshll.u32 %s1381_s24, 4  ;;  %s86_s23 = int_to_ptr.vmem [resolvable:$true] %s85_s23  ;;  %s101_s7 = int_to_ptr.vmem [resolvable:$true] %s100_s7 }
  0x12   :  { %91 = dma.hbm_to_vmem [thread:$0]  %s84_s19, 1024, %s86_s23, [#allocation9], %s1375_s25, %s1375_s25, %s1376_s26  }
  0x13   :  { %106 = dma.hbm_to_vmem [thread:$0]  %s99_s21, 1024, %s101_s7, [#allocation12], %s1375_s25, %s1375_s25, %s1376_s26  }
  0x14   :  { %1364 = dma.done.wait [#allocation3], 1024  }
  0x15   :  { %1365 = vsyncadd [#allocation3], 4294966272 }
  0x16   :  { %1366 = dma.done.wait [#allocation6], 2048  }
  0x17   :  { %1367 = vsyncadd [#allocation6], 4294965248 }
  0x18   :  { %1368 = dma.done.wait [#allocation9], 2048  }
  0x19   :  { %1369 = vsyncadd [#allocation9], 4294965248 }
  0x1a   :  { %1370 = dma.done.wait [#allocation12], 1024  }
  0x1b   :  { %1371 = vsyncadd [#allocation12], 4294966272  ;;  %v1123_v0 = vld [vmem:[#allocation5 + $0x38] sm:$0xff]  ;;  %v1122_v1 = vld [vmem:[#allocation5 + $0x30] sm:$0xff]  ;;  %s900_s12 = sshll.u32 %s1564_s11, 4  ;;  %s1383_s13 = smov 128   ;;  %s901_s12 = int_to_ptr.hbm [resolvable:$true] %s900_s12 }
  0x1c   :  { %265 = vmatpush.bf16.msra.mxu0 %v1123_v0  ;;  %1156 = vmatpush.bf16.msra.mxu1 %v1123_v0  ;;  %v1121_v2 = vld [vmem:[#allocation5 + $0x28] sm:$0xff]  ;;  %v1120_v3 = vld [vmem:[#allocation5 + $0x20] sm:$0xff]  ;;  %v1119_v4 = vld [vmem:[#allocation5 + $0x18] sm:$0xff]  ;;  %s1384_s14 = smov 8  }
  0x1d   :  { %1157 = vmatpush.bf16.msra.mxu2 %v1123_v0  ;;  %1158 = vmatpush.bf16.msra.mxu3 %v1123_v0  ;;  %v1118_v5 = vld [vmem:[#allocation5 + $0x10] sm:$0xff]  ;;  %v1117_v6 = vld [vmem:[#allocation5 + $0x8] sm:$0xff]  ;;  %v1116_v7 = vld [vmem:[#allocation5] sm:$0xff] }
  0x1e   :  { %v1131_v8 = vld [vmem:[#allocation7 + $0x38] sm:$0xff]  ;;  %v1108_v9 = vld [vmem:[#allocation2] sm:$0xff]  ;;  %v1110_v10 = vld [vmem:[#allocation2 + $0x10] sm:$0xff] }
  0x1f   :  { %v1112_v11 = vld [vmem:[#allocation2 + $0x20] sm:$0xff]  ;;  %v1114_v12 = vld [vmem:[#allocation2 + $0x30] sm:$0xff]  ;;  %v1129_v14 = vld [vmem:[#allocation7 + $0x28] sm:$0xff] }
  0x20   :  { %266 = vmatpush.bf16.msra.mxu0 %v1122_v1  ;;  %1159 = vmatpush.bf16.msra.mxu1 %v1122_v1  ;;  %v1130_v13 = vld [vmem:[#allocation7 + $0x30] sm:$0xff]  ;;  %v1128_v15 = vld [vmem:[#allocation7 + $0x20] sm:$0xff]  ;;  %v1127_v16 = vld [vmem:[#allocation7 + $0x18] sm:$0xff] }
  0x21   :  { %1160 = vmatpush.bf16.msra.mxu2 %v1122_v1  ;;  %1161 = vmatpush.bf16.msra.mxu3 %v1122_v1  ;;  %v1109_v17 = vld [vmem:[#allocation2 + $0x8] sm:$0xff]  ;;  %v1111_v18 = vld [vmem:[#allocation2 + $0x18] sm:$0xff]  ;;  %v1126_v21 = vld [vmem:[#allocation7 + $0x10] sm:$0xff] }
  0x22   :  { %v1113_v19 = vld [vmem:[#allocation2 + $0x28] sm:$0xff]  ;;  %v1115_v20 = vld [vmem:[#allocation2 + $0x38] sm:$0xff]  ;;  %v1124_v23 = vld [vmem:[#allocation7] sm:$0xff] }
  0x23   :  { %v1125_v22 = vld [vmem:[#allocation7 + $0x8] sm:$0xff]  ;;  %v1484_v25 = vld [vmem:[%s1555_s2] ss:$0 sm:$0xff]  ;;  %v1139_v61 = vld [vmem:[#allocation8 + $0x38] sm:$0xff] }
  0x24   :  { %267 = vmatpush.bf16.msra.mxu0 %v1121_v2  ;;  %1162 = vmatpush.bf16.msra.mxu1 %v1121_v2 }
  0x25   :  { %1163 = vmatpush.bf16.msra.mxu2 %v1121_v2  ;;  %1164 = vmatpush.bf16.msra.mxu3 %v1121_v2 }
  0x28   :  { %268 = vmatpush.bf16.msra.mxu0 %v1120_v3  ;;  %1165 = vmatpush.bf16.msra.mxu1 %v1120_v3 }
  0x29   :  { %1166 = vmatpush.bf16.msra.mxu2 %v1120_v3  ;;  %1167 = vmatpush.bf16.msra.mxu3 %v1120_v3 }
  0x2c   :  { %269 = vmatpush.bf16.msra.mxu0 %v1119_v4  ;;  %1168 = vmatpush.bf16.msra.mxu1 %v1119_v4 }
  0x2d   :  { %1169 = vmatpush.bf16.msra.mxu2 %v1119_v4  ;;  %1170 = vmatpush.bf16.msra.mxu3 %v1119_v4 }
  0x30   :  { %270 = vmatpush.bf16.msra.mxu0 %v1118_v5  ;;  %1171 = vmatpush.bf16.msra.mxu1 %v1118_v5 }
  0x31   :  { %1172 = vmatpush.bf16.msra.mxu2 %v1118_v5  ;;  %1173 = vmatpush.bf16.msra.mxu3 %v1118_v5 }
  0x34   :  { %271 = vmatpush.bf16.msra.mxu0 %v1117_v6  ;;  %1174 = vmatpush.bf16.msra.mxu1 %v1117_v6 }
  0x35   :  { %1175 = vmatpush.bf16.msra.mxu2 %v1117_v6  ;;  %1176 = vmatpush.bf16.msra.mxu3 %v1117_v6  ;;  %v1138_v6 = vld [vmem:[#allocation8 + $0x30] sm:$0xff] }
  0x38   :  { %272 = vmatpush.bf16.msra.mxu0 %v1116_v7  ;;  %1177 = vmatpush.bf16.msra.mxu1 %v1116_v7 }
  0x39   :  { %1178 = vmatpush.bf16.msra.mxu2 %v1116_v7  ;;  %1179 = vmatpush.bf16.msra.mxu3 %v1116_v7  ;;  %v1137_v7 = vld [vmem:[#allocation8 + $0x28] sm:$0xff] }
  0x3b   :  { %273 = vmatmul.bf16.vlgmr.msra.gmra.mxu0 %v1108_v9  ;;  %283 = vmatmul.bf16.vlgmr.msra.gmra.mxu1 %v1110_v10 }
  0x3c   :  { %406 = vmatpush.bf16.msrb.mxu1 %v1131_v8  ;;  %293 = vmatmul.bf16.vlgmr.msra.gmra.mxu2 %v1112_v11  ;;  %v1136_v8 = vld [vmem:[#allocation8 + $0x20] sm:$0xff] }
  0x3d   :  { %303 = vmatmul.bf16.vlgmr.msra.gmra.mxu3 %v1114_v12  ;;  %547 = vmatpush.bf16.msrb.mxu2 %v1139_v61  ;;  %v1135_v12 = vld [vmem:[#allocation8 + $0x18] sm:$0xff] }
  0x40   :  { %407 = vmatpush.bf16.msrb.mxu1 %v1130_v13 }
  0x41   :  { %548 = vmatpush.bf16.msrb.mxu2 %v1138_v6  ;;  %v1146_v6 = vld [vmem:[#allocation10 + $0x30] sm:$0xff] }
  0x44   :  { %408 = vmatpush.bf16.msrb.mxu1 %v1129_v14 }
  0x45   :  { %549 = vmatpush.bf16.msrb.mxu2 %v1137_v7  ;;  %v1145_v7 = vld [vmem:[#allocation10 + $0x28] sm:$0xff] }
  0x48   :  { %409 = vmatpush.bf16.msrb.mxu1 %v1128_v15 }
  0x49   :  { %550 = vmatpush.bf16.msrb.mxu2 %v1136_v8 }
  0x4b   :  { %278 = vmatmul.bf16.gmra.mxu0 %v1109_v17  ;;  %288 = vmatmul.bf16.gmra.mxu1 %v1111_v18  ;;  %v1133_v17 = vld [vmem:[#allocation8 + $0x8] sm:$0xff] }
  0x4c   :  { %410 = vmatpush.bf16.msrb.mxu1 %v1127_v16  ;;  %298 = vmatmul.bf16.gmra.mxu2 %v1113_v19  ;;  %v1134_v16 = vld [vmem:[#allocation8 + $0x10] sm:$0xff] }
  0x4d   :  { %308 = vmatmul.bf16.gmra.mxu3 %v1115_v20  ;;  %551 = vmatpush.bf16.msrb.mxu2 %v1135_v12 }
  0x50   :  { %411 = vmatpush.bf16.msrb.mxu1 %v1126_v21  ;;  %v1132_v21 = vld [vmem:[#allocation8] sm:$0xff] }
  0x51   :  { %552 = vmatpush.bf16.msrb.mxu2 %v1134_v16 }
  0x54   :  { %412 = vmatpush.bf16.msrb.mxu1 %v1125_v22 }
  0x55   :  { %553 = vmatpush.bf16.msrb.mxu2 %v1133_v17  ;;  %v1142_v17 = vld [vmem:[#allocation10 + $0x10] sm:$0xff] }
  0x58   :  { %413 = vmatpush.bf16.msrb.mxu1 %v1124_v23 }
  0x59   :  { %554 = vmatpush.bf16.msrb.mxu2 %v1132_v21 }
  0xb8   :  { %v274_v24 = vpop.f32.mrf.mxu0  ;;  %v284_v33 = vpop.f32.mrf.mxu1 }
  0xb9   :  { %v275_v26 = vadd.f32 %v1484_v25, %v274_v24  ;;  %v285_v41 = vadd.f32 %v1484_v25, %v284_v33 }
  0xbb   :  { %v314_v29 = vmax.f32 %v275_v26, 0.0  ;;  %v318_v44 = vmax.f32 %v285_v41, 0.0 }
  0xbf   :  { %v294_v48 = vpop.f32.mrf.mxu2 }
  0xc0   :  { %v276_v27 = vpop.f32.mrf.mxu0  ;;  %v286_v40 = vpop.f32.mrf.mxu1  ;;  %v295_v55 = vadd.f32 %v1484_v25, %v294_v48 }
  0xc1   :  { %v277_v28 = vadd.f32 %v1484_v25, %v276_v27  ;;  %v287_v42 = vadd.f32 %v1484_v25, %v286_v40  ;;  %v304_v63 = vpop.f32.mrf.mxu3  ;;  %v1505_v27 = vld [vmem:[%s1557_s4] ss:$0 sm:$0xff] }
  0xc2   :  { %v322_v58 = vmax.f32 %v295_v55, 0.0  ;;  %v305_v9 = vadd.f32 %v1484_v25, %v304_v63 }
  0xc3   :  { %v315_v30 = vmax.f32 %v277_v28, 0.0  ;;  %v319_v45 = vmax.f32 %v287_v42, 0.0 }
  0xc4   :  { %v326_v13 = vmax.f32 %v305_v9, 0.0 }
  0xc5   :  { %v330_v31 = vpack.c.bf16 %v315_v30, %v314_v29  ;;  %v332_v46 = vpack.c.bf16 %v319_v45, %v318_v44 }
  0xc7   :  { %414 = vmatmul.bf16.vlgmr.msrb.gmra.mxu1 %v330_v31  ;;  %v296_v54 = vpop.f32.mrf.mxu2 }
  0xc8   :  { %v279_v32 = vpop.f32.mrf.mxu0  ;;  %v289_v43 = vpop.f32.mrf.mxu1  ;;  %v297_v56 = vadd.f32 %v1484_v25, %v296_v54 }
  0xc9   :  { %v280_v34 = vadd.f32 %v1484_v25, %v279_v32  ;;  %v290_v49 = vadd.f32 %v1484_v25, %v289_v43  ;;  %v306_v5 = vpop.f32.mrf.mxu3 }
  0xca   :  { %v323_v59 = vmax.f32 %v297_v56, 0.0  ;;  %v307_v10 = vadd.f32 %v1484_v25, %v306_v5 }
  0xcb   :  { %v316_v37 = vmax.f32 %v280_v34, 0.0  ;;  %v320_v51 = vmax.f32 %v290_v49, 0.0 }
  0xcc   :  { %v334_v60 = vpack.c.bf16 %v323_v59, %v322_v58  ;;  %v327_v14 = vmax.f32 %v307_v10, 0.0 }
  0xce   :  { %v336_v15 = vpack.c.bf16 %v327_v14, %v326_v13 }
  0xcf   :  { %v299_v57 = vpop.f32.mrf.mxu2 }
  0xd0   :  { %v281_v35 = vpop.f32.mrf.mxu0  ;;  %v291_v47 = vpop.f32.mrf.mxu1  ;;  %v300_v0 = vadd.f32 %v1484_v25, %v299_v57 }
  0xd1   :  { %v282_v36 = vadd.f32 %v1484_v25, %v281_v35  ;;  %v292_v50 = vadd.f32 %v1484_v25, %v291_v47  ;;  %v309_v11 = vpop.f32.mrf.mxu3 }
  0xd2   :  { %v324_v2 = vmax.f32 %v300_v0, 0.0  ;;  %v310_v19 = vadd.f32 %v1484_v25, %v309_v11  ;;  %v1144_v11 = vld [vmem:[#allocation10 + $0x20] sm:$0xff] }
  0xd3   :  { %v317_v38 = vmax.f32 %v282_v36, 0.0  ;;  %v321_v52 = vmax.f32 %v292_v50, 0.0 }
  0xd4   :  { %v328_v22 = vmax.f32 %v310_v19, 0.0 }
  0xd5   :  { %v331_v39 = vpack.c.bf16 %v317_v38, %v316_v37  ;;  %v333_v53 = vpack.c.bf16 %v321_v52, %v320_v51 }
  0xd7   :  { %419 = vmatmul.bf16.gmra.mxu1 %v331_v39  ;;  %v301_v62 = vpop.f32.mrf.mxu2 }
  0xd8   :  { %v302_v1 = vadd.f32 %v1484_v25, %v301_v62 }
  0xd9   :  { %v311_v18 = vpop.f32.mrf.mxu3 }
  0xda   :  { %v325_v3 = vmax.f32 %v302_v1, 0.0  ;;  %v312_v20 = vadd.f32 %v1484_v25, %v311_v18  ;;  %v1141_v18 = vld [vmem:[#allocation10 + $0x8] sm:$0xff] }
  0xdc   :  { %v335_v4 = vpack.c.bf16 %v325_v3, %v324_v2  ;;  %v329_v23 = vmax.f32 %v312_v20, 0.0 }
  0xde   :  { %v337_v24 = vpack.c.bf16 %v329_v23, %v328_v22 }
  0xe7   :  { %424 = vmatmul.bf16.gmra.mxu1 %v332_v46 }
  0xf7   :  { %429 = vmatmul.bf16.gmra.mxu1 %v333_v53 }
 0x107   :  { %434 = vmatmul.bf16.gmra.mxu1 %v334_v60 }
 0x117   :  { %439 = vmatmul.bf16.gmra.mxu1 %v335_v4  ;;  %v1147_v4 = vld [vmem:[#allocation10 + $0x38] sm:$0xff] }
 0x118   :  { %688 = vmatpush.bf16.msrb.mxu3 %v1147_v4 }
 0x11c   :  { %689 = vmatpush.bf16.msrb.mxu3 %v1146_v6 }
 0x120   :  { %690 = vmatpush.bf16.msrb.mxu3 %v1145_v7  ;;  %v1154_v7 = vld [vmem:[#allocation11 + $0x30] sm:$0xff] }
 0x124   :  { %691 = vmatpush.bf16.msrb.mxu3 %v1144_v11 }
 0x127   :  { %444 = vmatmul.bf16.gmra.mxu1 %v336_v15  ;;  %v1143_v15 = vld [vmem:[#allocation10 + $0x18] sm:$0xff] }
 0x128   :  { %692 = vmatpush.bf16.msrb.mxu3 %v1143_v15 }
 0x12c   :  { %693 = vmatpush.bf16.msrb.mxu3 %v1142_v17 }
 0x130   :  { %694 = vmatpush.bf16.msrb.mxu3 %v1141_v18  ;;  %v1150_v18 = vld [vmem:[#allocation11 + $0x10] sm:$0xff] }
 0x137   :  { %449 = vmatmul.bf16.gmra.mxu1 %v337_v24  ;;  %v1140_v24 = vld [vmem:[#allocation10] sm:$0xff] }
 0x138   :  { %695 = vmatpush.bf16.msrb.mxu3 %v1140_v24 }
 0x144   :  { %v415_v26 = vpop.f32.mrf.mxu1 }
 0x145   :  { %v416_v28 = vadd.f32 %v1505_v27, %v415_v26 }
 0x147   :  { %v455_v31 = vmax.f32 %v416_v28, 0.0 }
 0x14c   :  { %v417_v29 = vpop.f32.mrf.mxu1 }
 0x14d   :  { %v418_v30 = vadd.f32 %v1505_v27, %v417_v29  ;;  %v1526_v29 = vld [vmem:[%s1559_s6] ss:$0 sm:$0xff] }
 0x14f   :  { %v456_v32 = vmax.f32 %v418_v30, 0.0 }
 0x151   :  { %v471_v25 = vpack.c.bf16 %v456_v32, %v455_v31 }
 0x153   :  { %555 = vmatmul.bf16.vlgmr.msrb.gmra.mxu2 %v471_v25 }
 0x154   :  { %v420_v33 = vpop.f32.mrf.mxu1 }
 0x155   :  { %v421_v34 = vadd.f32 %v1505_v27, %v420_v33 }
 0x157   :  { %v457_v37 = vmax.f32 %v421_v34, 0.0 }
 0x15c   :  { %v422_v35 = vpop.f32.mrf.mxu1 }
 0x15d   :  { %v423_v36 = vadd.f32 %v1505_v27, %v422_v35 }
 0x15f   :  { %v458_v38 = vmax.f32 %v423_v36, 0.0 }
 0x161   :  { %v472_v39 = vpack.c.bf16 %v458_v38, %v457_v37 }
 0x163   :  { %560 = vmatmul.bf16.gmra.mxu2 %v472_v39 }
 0x164   :  { %v425_v40 = vpop.f32.mrf.mxu1 }
 0x165   :  { %v426_v41 = vadd.f32 %v1505_v27, %v425_v40 }
 0x167   :  { %v459_v44 = vmax.f32 %v426_v41, 0.0 }
 0x16c   :  { %v427_v42 = vpop.f32.mrf.mxu1 }
 0x16d   :  { %v428_v43 = vadd.f32 %v1505_v27, %v427_v42 }
 0x16f   :  { %v460_v45 = vmax.f32 %v428_v43, 0.0 }
 0x171   :  { %v473_v46 = vpack.c.bf16 %v460_v45, %v459_v44 }
 0x173   :  { %565 = vmatmul.bf16.gmra.mxu2 %v473_v46 }
 0x174   :  { %v430_v47 = vpop.f32.mrf.mxu1 }
 0x175   :  { %v431_v48 = vadd.f32 %v1505_v27, %v430_v47 }
 0x177   :  { %v461_v51 = vmax.f32 %v431_v48, 0.0 }
 0x17c   :  { %v432_v49 = vpop.f32.mrf.mxu1 }
 0x17d   :  { %v433_v50 = vadd.f32 %v1505_v27, %v432_v49 }
 0x17f   :  { %v462_v52 = vmax.f32 %v433_v50, 0.0 }
 0x181   :  { %v474_v53 = vpack.c.bf16 %v462_v52, %v461_v51 }
 0x183   :  { %570 = vmatmul.bf16.gmra.mxu2 %v474_v53 }
 0x184   :  { %v435_v54 = vpop.f32.mrf.mxu1 }
 0x185   :  { %v436_v55 = vadd.f32 %v1505_v27, %v435_v54 }
 0x187   :  { %v463_v58 = vmax.f32 %v436_v55, 0.0 }
 0x18c   :  { %v437_v56 = vpop.f32.mrf.mxu1 }
 0x18d   :  { %v438_v57 = vadd.f32 %v1505_v27, %v437_v56 }
 0x18f   :  { %v464_v59 = vmax.f32 %v438_v57, 0.0 }
 0x191   :  { %v475_v60 = vpack.c.bf16 %v464_v59, %v463_v58 }
 0x193   :  { %575 = vmatmul.bf16.gmra.mxu2 %v475_v60 }
 0x194   :  { %v440_v61 = vpop.f32.mrf.mxu1 }
 0x195   :  { %v441_v62 = vadd.f32 %v1505_v27, %v440_v61 }
 0x197   :  { %v465_v1 = vmax.f32 %v441_v62, 0.0 }
 0x19c   :  { %v442_v63 = vpop.f32.mrf.mxu1 }
 0x19d   :  { %v443_v0 = vadd.f32 %v1505_v27, %v442_v63 }
 0x19f   :  { %v466_v2 = vmax.f32 %v443_v0, 0.0 }
 0x1a1   :  { %v476_v3 = vpack.c.bf16 %v466_v2, %v465_v1 }
 0x1a3   :  { %580 = vmatmul.bf16.gmra.mxu2 %v476_v3 }
 0x1a4   :  { %v445_v5 = vpop.f32.mrf.mxu1 }
 0x1a5   :  { %v446_v8 = vadd.f32 %v1505_v27, %v445_v5  ;;  %v1155_v5 = vld [vmem:[#allocation11 + $0x38] sm:$0xff] }
 0x1a6   :  { %829 = vmatpush.bf16.msrb.mxu0 %v1155_v5 }
 0x1a7   :  { %v467_v12 = vmax.f32 %v446_v8, 0.0  ;;  %v1153_v8 = vld [vmem:[#allocation11 + $0x28] sm:$0xff] }
 0x1aa   :  { %830 = vmatpush.bf16.msrb.mxu0 %v1154_v7 }
 0x1ac   :  { %v447_v9 = vpop.f32.mrf.mxu1 }
 0x1ad   :  { %v448_v10 = vadd.f32 %v1505_v27, %v447_v9 }
 0x1ae   :  { %831 = vmatpush.bf16.msrb.mxu0 %v1153_v8 }
 0x1af   :  { %v468_v13 = vmax.f32 %v448_v10, 0.0 }
 0x1b1   :  { %v477_v14 = vpack.c.bf16 %v468_v13, %v467_v12  ;;  %v1152_v12 = vld [vmem:[#allocation11 + $0x20] sm:$0xff] }
 0x1b2   :  { %832 = vmatpush.bf16.msrb.mxu0 %v1152_v12 }
 0x1b3   :  { %585 = vmatmul.bf16.gmra.mxu2 %v477_v14 }
 0x1b4   :  { %v450_v16 = vpop.f32.mrf.mxu1 }
 0x1b5   :  { %v451_v19 = vadd.f32 %v1505_v27, %v450_v16  ;;  %v1151_v16 = vld [vmem:[#allocation11 + $0x18] sm:$0xff] }
 0x1b6   :  { %833 = vmatpush.bf16.msrb.mxu0 %v1151_v16 }
 0x1b7   :  { %v469_v22 = vmax.f32 %v451_v19, 0.0  ;;  %v1149_v19 = vld [vmem:[#allocation11 + $0x8] sm:$0xff] }
 0x1ba   :  { %834 = vmatpush.bf16.msrb.mxu0 %v1150_v18 }
 0x1bc   :  { %v452_v20 = vpop.f32.mrf.mxu1 }
 0x1bd   :  { %v453_v21 = vadd.f32 %v1505_v27, %v452_v20 }
 0x1be   :  { %835 = vmatpush.bf16.msrb.mxu0 %v1149_v19 }
 0x1bf   :  { %v470_v23 = vmax.f32 %v453_v21, 0.0 }
 0x1c1   :  { %v478_v26 = vpack.c.bf16 %v470_v23, %v469_v22 }
 0x1c3   :  { %590 = vmatmul.bf16.gmra.mxu2 %v478_v26  ;;  %v1148_v26 = vld [vmem:[#allocation11] sm:$0xff] }
 0x1c4   :  { %836 = vmatpush.bf16.msrb.mxu0 %v1148_v26 }
 0x1d6   :  { %v556_v28 = vpop.f32.mrf.mxu2 }
 0x1d7   :  { %v557_v30 = vadd.f32 %v1526_v29, %v556_v28 }
 0x1d9   :  { %v596_v25 = vmax.f32 %v557_v30, 0.0 }
 0x1de   :  { %v558_v31 = vpop.f32.mrf.mxu2 }
 0x1df   :  { %v559_v32 = vadd.f32 %v1526_v29, %v558_v31  ;;  %v1194_v31 = vld [vmem:[%s1561_s8] ss:$0 sm:$0xff] }
 0x1e1   :  { %v597_v27 = vmax.f32 %v559_v32, 0.0 }
 0x1e3   :  { %v612_v33 = vpack.c.bf16 %v597_v27, %v596_v25 }
 0x1e5   :  { %696 = vmatmul.bf16.vlgmr.msrb.gmra.mxu3 %v612_v33 }
 0x1e6   :  { %v561_v34 = vpop.f32.mrf.mxu2 }
 0x1e7   :  { %v562_v35 = vadd.f32 %v1526_v29, %v561_v34 }
 0x1e9   :  { %v598_v38 = vmax.f32 %v562_v35, 0.0 }
 0x1ee   :  { %v563_v36 = vpop.f32.mrf.mxu2 }
 0x1ef   :  { %v564_v37 = vadd.f32 %v1526_v29, %v563_v36 }
 0x1f1   :  { %v599_v39 = vmax.f32 %v564_v37, 0.0 }
 0x1f3   :  { %v613_v40 = vpack.c.bf16 %v599_v39, %v598_v38 }
 0x1f5   :  { %701 = vmatmul.bf16.gmra.mxu3 %v613_v40 }
 0x1f6   :  { %v566_v41 = vpop.f32.mrf.mxu2 }
 0x1f7   :  { %v567_v42 = vadd.f32 %v1526_v29, %v566_v41 }
 0x1f9   :  { %v600_v45 = vmax.f32 %v567_v42, 0.0 }
 0x1fe   :  { %v568_v43 = vpop.f32.mrf.mxu2 }
 0x1ff   :  { %v569_v44 = vadd.f32 %v1526_v29, %v568_v43 }
 0x201   :  { %v601_v46 = vmax.f32 %v569_v44, 0.0 }
 0x203   :  { %v614_v47 = vpack.c.bf16 %v601_v46, %v600_v45 }
 0x205   :  { %706 = vmatmul.bf16.gmra.mxu3 %v614_v47 }
 0x206   :  { %v571_v48 = vpop.f32.mrf.mxu2 }
 0x207   :  { %v572_v49 = vadd.f32 %v1526_v29, %v571_v48 }
 0x209   :  { %v602_v52 = vmax.f32 %v572_v49, 0.0 }
 0x20e   :  { %v573_v50 = vpop.f32.mrf.mxu2 }
 0x20f   :  { %v574_v51 = vadd.f32 %v1526_v29, %v573_v50 }
 0x211   :  { %v603_v53 = vmax.f32 %v574_v51, 0.0 }
 0x213   :  { %v615_v54 = vpack.c.bf16 %v603_v53, %v602_v52 }
 0x215   :  { %711 = vmatmul.bf16.gmra.mxu3 %v615_v54 }
 0x216   :  { %v576_v55 = vpop.f32.mrf.mxu2 }
 0x217   :  { %v577_v56 = vadd.f32 %v1526_v29, %v576_v55 }
 0x219   :  { %v604_v59 = vmax.f32 %v577_v56, 0.0 }
 0x21e   :  { %v578_v57 = vpop.f32.mrf.mxu2 }
 0x21f   :  { %v579_v58 = vadd.f32 %v1526_v29, %v578_v57 }
 0x221   :  { %v605_v60 = vmax.f32 %v579_v58, 0.0 }
 0x223   :  { %v616_v61 = vpack.c.bf16 %v605_v60, %v604_v59 }
 0x225   :  { %716 = vmatmul.bf16.gmra.mxu3 %v616_v61 }
 0x226   :  { %v581_v62 = vpop.f32.mrf.mxu2 }
 0x227   :  { %v582_v63 = vadd.f32 %v1526_v29, %v581_v62 }
 0x229   :  { %v606_v2 = vmax.f32 %v582_v63, 0.0 }
 0x22e   :  { %v583_v0 = vpop.f32.mrf.mxu2 }
 0x22f   :  { %v584_v1 = vadd.f32 %v1526_v29, %v583_v0 }
 0x231   :  { %v607_v3 = vmax.f32 %v584_v1, 0.0 }
 0x233   :  { %v617_v4 = vpack.c.bf16 %v607_v3, %v606_v2 }
 0x235   :  { %721 = vmatmul.bf16.gmra.mxu3 %v617_v4 }
 0x236   :  { %v586_v6 = vpop.f32.mrf.mxu2 }
 0x237   :  { %v587_v9 = vadd.f32 %v1526_v29, %v586_v6 }
 0x239   :  { %v608_v13 = vmax.f32 %v587_v9, 0.0 }
 0x23e   :  { %v588_v10 = vpop.f32.mrf.mxu2 }
 0x23f   :  { %v589_v11 = vadd.f32 %v1526_v29, %v588_v10 }
 0x241   :  { %v609_v14 = vmax.f32 %v589_v11, 0.0 }
 0x243   :  { %v618_v15 = vpack.c.bf16 %v609_v14, %v608_v13 }
 0x245   :  { %726 = vmatmul.bf16.gmra.mxu3 %v618_v15 }
 0x246   :  { %v591_v17 = vpop.f32.mrf.mxu2 }
 0x247   :  { %v592_v20 = vadd.f32 %v1526_v29, %v591_v17 }
 0x249   :  { %v610_v23 = vmax.f32 %v592_v20, 0.0  ;;  %v1195_v20 = vld [vmem:[%s1563_s10] ss:$0 sm:$0xff]  ;;  %s1382_s10 = smov [#allocation13]  }
 0x24a   :  { %s898_s30 = sshll.u32 %s1382_s10, 4  ;;  %s899_s30 = int_to_ptr.vmem [resolvable:$true] %s898_s30 }
 0x24e   :  { %v593_v21 = vpop.f32.mrf.mxu2 }
 0x24f   :  { %v594_v22 = vadd.f32 %v1526_v29, %v593_v21 }
 0x251   :  { %v611_v24 = vmax.f32 %v594_v22, 0.0 }
 0x253   :  { %v619_v28 = vpack.c.bf16 %v611_v24, %v610_v23 }
 0x255   :  { %731 = vmatmul.bf16.gmra.mxu3 %v619_v28 }
 0x268   :  { %v697_v30 = vpop.f32.mrf.mxu3 }
 0x269   :  { %v698_v32 = vadd.f32 %v1194_v31, %v697_v30 }
 0x26b   :  { %v737_v33 = vmax.f32 %v698_v32, 0.0 }
 0x270   :  { %v699_v25 = vpop.f32.mrf.mxu3 }
 0x271   :  { %v700_v27 = vadd.f32 %v1194_v31, %v699_v25 }
 0x273   :  { %v738_v34 = vmax.f32 %v700_v27, 0.0 }
 0x275   :  { %v753_v35 = vpack.c.bf16 %v738_v34, %v737_v33 }
 0x277   :  { %837 = vmatmul.bf16.vlgmr.msrb.gmra.mxu0 %v753_v35 }
 0x278   :  { %v702_v29 = vpop.f32.mrf.mxu3 }
 0x279   :  { %v703_v36 = vadd.f32 %v1194_v31, %v702_v29 }
 0x27b   :  { %v739_v39 = vmax.f32 %v703_v36, 0.0 }
 0x280   :  { %v704_v37 = vpop.f32.mrf.mxu3 }
 0x281   :  { %v705_v38 = vadd.f32 %v1194_v31, %v704_v37 }
 0x283   :  { %v740_v40 = vmax.f32 %v705_v38, 0.0 }
 0x285   :  { %v754_v41 = vpack.c.bf16 %v740_v40, %v739_v39 }
 0x287   :  { %842 = vmatmul.bf16.gmra.mxu0 %v754_v41 }
 0x288   :  { %v707_v42 = vpop.f32.mrf.mxu3 }
 0x289   :  { %v708_v43 = vadd.f32 %v1194_v31, %v707_v42 }
 0x28b   :  { %v741_v46 = vmax.f32 %v708_v43, 0.0 }
 0x290   :  { %v709_v44 = vpop.f32.mrf.mxu3 }
 0x291   :  { %v710_v45 = vadd.f32 %v1194_v31, %v709_v44 }
 0x293   :  { %v742_v47 = vmax.f32 %v710_v45, 0.0 }
 0x295   :  { %v755_v48 = vpack.c.bf16 %v742_v47, %v741_v46 }
 0x297   :  { %847 = vmatmul.bf16.gmra.mxu0 %v755_v48 }
 0x298   :  { %v712_v49 = vpop.f32.mrf.mxu3 }
 0x299   :  { %v713_v50 = vadd.f32 %v1194_v31, %v712_v49 }
 0x29b   :  { %v743_v53 = vmax.f32 %v713_v50, 0.0 }
 0x2a0   :  { %v714_v51 = vpop.f32.mrf.mxu3 }
 0x2a1   :  { %v715_v52 = vadd.f32 %v1194_v31, %v714_v51 }
 0x2a3   :  { %v744_v54 = vmax.f32 %v715_v52, 0.0 }
 0x2a5   :  { %v756_v55 = vpack.c.bf16 %v744_v54, %v743_v53 }
 0x2a7   :  { %852 = vmatmul.bf16.gmra.mxu0 %v756_v55 }
 0x2a8   :  { %v717_v56 = vpop.f32.mrf.mxu3 }
 0x2a9   :  { %v718_v57 = vadd.f32 %v1194_v31, %v717_v56 }
 0x2ab   :  { %v745_v60 = vmax.f32 %v718_v57, 0.0 }
 0x2b0   :  { %v719_v58 = vpop.f32.mrf.mxu3 }
 0x2b1   :  { %v720_v59 = vadd.f32 %v1194_v31, %v719_v58 }
 0x2b3   :  { %v746_v61 = vmax.f32 %v720_v59, 0.0 }
 0x2b5   :  { %v757_v62 = vpack.c.bf16 %v746_v61, %v745_v60 }
 0x2b7   :  { %857 = vmatmul.bf16.gmra.mxu0 %v757_v62 }
 0x2b8   :  { %v722_v63 = vpop.f32.mrf.mxu3 }
 0x2b9   :  { %v723_v0 = vadd.f32 %v1194_v31, %v722_v63 }
 0x2bb   :  { %v747_v3 = vmax.f32 %v723_v0, 0.0 }
 0x2c0   :  { %v724_v1 = vpop.f32.mrf.mxu3 }
 0x2c1   :  { %v725_v2 = vadd.f32 %v1194_v31, %v724_v1 }
 0x2c3   :  { %v748_v4 = vmax.f32 %v725_v2, 0.0 }
 0x2c5   :  { %v758_v5 = vpack.c.bf16 %v748_v4, %v747_v3 }
 0x2c7   :  { %862 = vmatmul.bf16.gmra.mxu0 %v758_v5 }
 0x2c8   :  { %v727_v6 = vpop.f32.mrf.mxu3 }
 0x2c9   :  { %v728_v7 = vadd.f32 %v1194_v31, %v727_v6 }
 0x2cb   :  { %v749_v10 = vmax.f32 %v728_v7, 0.0 }
 0x2d0   :  { %v729_v8 = vpop.f32.mrf.mxu3 }
 0x2d1   :  { %v730_v9 = vadd.f32 %v1194_v31, %v729_v8 }
 0x2d3   :  { %v750_v11 = vmax.f32 %v730_v9, 0.0 }
 0x2d5   :  { %v759_v12 = vpack.c.bf16 %v750_v11, %v749_v10 }
 0x2d7   :  { %867 = vmatmul.bf16.gmra.mxu0 %v759_v12 }
 0x2d8   :  { %v732_v13 = vpop.f32.mrf.mxu3 }
 0x2d9   :  { %v733_v14 = vadd.f32 %v1194_v31, %v732_v13 }
 0x2db   :  { %v751_v17 = vmax.f32 %v733_v14, 0.0 }
 0x2e0   :  { %v734_v15 = vpop.f32.mrf.mxu3 }
 0x2e1   :  { %v735_v16 = vadd.f32 %v1194_v31, %v734_v15 }
 0x2e3   :  { %v752_v18 = vmax.f32 %v735_v16, 0.0 }
 0x2e5   :  { %v760_v19 = vpack.c.bf16 %v752_v18, %v751_v17 }
 0x2e7   :  { %872 = vmatmul.bf16.gmra.mxu0 %v760_v19 }
 0x2f4   :  { %v838_v21 = vpop.f32.mrf.mxu0 }
 0x2f5   :  { %v839_v22 = vadd.f32 %v1195_v20, %v838_v21 }
 0x2f7   :  { %878 = vst [vmem:[#allocation13] sm:$0xff] %v839_v22 }
 0x2fc   :  { %v840_v23 = vpop.f32.mrf.mxu0 }
 0x2fd   :  { %v841_v24 = vadd.f32 %v1195_v20, %v840_v23 }
 0x2ff   :  { %879 = vst [vmem:[#allocation13 + $0x8] sm:$0xff] %v841_v24 }
 0x304   :  { %v843_v26 = vpop.f32.mrf.mxu0 }
 0x305   :  { %v844_v28 = vadd.f32 %v1195_v20, %v843_v26 }
 0x307   :  { %880 = vst [vmem:[#allocation13 + $0x10] sm:$0xff] %v844_v28 }
 0x30c   :  { %v845_v30 = vpop.f32.mrf.mxu0 }
 0x30d   :  { %v846_v32 = vadd.f32 %v1195_v20, %v845_v30 }
 0x30f   :  { %881 = vst [vmem:[#allocation13 + $0x18] sm:$0xff] %v846_v32 }
 0x314   :  { %v848_v31 = vpop.f32.mrf.mxu0 }
 0x315   :  { %v849_v25 = vadd.f32 %v1195_v20, %v848_v31 }
 0x317   :  { %882 = vst [vmem:[#allocation13 + $0x20] sm:$0xff] %v849_v25 }
 0x31c   :  { %v850_v27 = vpop.f32.mrf.mxu0 }
 0x31d   :  { %v851_v33 = vadd.f32 %v1195_v20, %v850_v27 }
 0x31f   :  { %883 = vst [vmem:[#allocation13 + $0x28] sm:$0xff] %v851_v33 }
 0x324   :  { %v853_v34 = vpop.f32.mrf.mxu0 }
 0x325   :  { %v854_v35 = vadd.f32 %v1195_v20, %v853_v34 }
 0x327   :  { %884 = vst [vmem:[#allocation13 + $0x30] sm:$0xff] %v854_v35 }
 0x32c   :  { %v855_v29 = vpop.f32.mrf.mxu0 }
 0x32d   :  { %v856_v36 = vadd.f32 %v1195_v20, %v855_v29 }
 0x32f   :  { %885 = vst [vmem:[#allocation13 + $0x38] sm:$0xff] %v856_v36 }
 0x334   :  { %v858_v37 = vpop.f32.mrf.mxu0 }
 0x335   :  { %v859_v38 = vadd.f32 %v1195_v20, %v858_v37 }
 0x337   :  { %886 = vst [vmem:[#allocation13 + $0x40] sm:$0xff] %v859_v38 }
 0x33c   :  { %v860_v39 = vpop.f32.mrf.mxu0 }
 0x33d   :  { %v861_v40 = vadd.f32 %v1195_v20, %v860_v39 }
 0x33f   :  { %887 = vst [vmem:[#allocation13 + $0x48] sm:$0xff] %v861_v40 }
 0x344   :  { %v863_v41 = vpop.f32.mrf.mxu0 }
 0x345   :  { %v864_v42 = vadd.f32 %v1195_v20, %v863_v41 }
 0x347   :  { %888 = vst [vmem:[#allocation13 + $0x50] sm:$0xff] %v864_v42 }
 0x34c   :  { %v865_v43 = vpop.f32.mrf.mxu0 }
 0x34d   :  { %v866_v44 = vadd.f32 %v1195_v20, %v865_v43 }
 0x34f   :  { %889 = vst [vmem:[#allocation13 + $0x58] sm:$0xff] %v866_v44 }
 0x354   :  { %v868_v45 = vpop.f32.mrf.mxu0 }
 0x355   :  { %v869_v46 = vadd.f32 %v1195_v20, %v868_v45 }
 0x357   :  { %890 = vst [vmem:[#allocation13 + $0x60] sm:$0xff] %v869_v46 }
 0x35c   :  { %v870_v47 = vpop.f32.mrf.mxu0 }
 0x35d   :  { %v871_v48 = vadd.f32 %v1195_v20, %v870_v47 }
 0x35f   :  { %891 = vst [vmem:[#allocation13 + $0x68] sm:$0xff] %v871_v48 }
 0x364   :  { %v873_v49 = vpop.f32.mrf.mxu0 }
 0x365   :  { %v874_v50 = vadd.f32 %v1195_v20, %v873_v49 }
 0x367   :  { %892 = vst [vmem:[#allocation13 + $0x70] sm:$0xff] %v874_v50 }
 0x36c   :  { %v875_v51 = vpop.f32.mrf.mxu0 }
 0x36d   :  { %v876_v52 = vadd.f32 %v1195_v20, %v875_v51 }
 0x36f   :  { %893 = vst [vmem:[#allocation13 + $0x78] sm:$0xff] %v876_v52 }
 0x370   :  { %906 = dma.vmem_to_hbm [thread:$0]  %s899_s30, 2048, %s901_s12, [#allocation4], %s1383_s13, %s1383_s13, %s1384_s14  }
 0x371   :  { %1372 = dma.done.wait [#allocation4], 2048  }
 0x372   :  { %1373 = vsyncadd [#allocation4], 4294965248 }
 0x373   :  { %911 = vsyncpa [#allocation3], 1 }
 0x374   :  { %912 = vsyncpa [#allocation6], 1 }
 0x375   :  { %913 = vsyncpa [#allocation9], 1 }
 0x376   :  { %914 = vsyncpa [#allocation12], 1 }
 0x377   :  { %915 = vsyncpa [#allocation4], 1 }

</bundles_post_ra>
